<compile_context>
chip_gen: v6e
topology: v6e:2x2x1
jax: 0.10.0
libtpu: 0.0.40
codegen_flags: <defaults>
</compile_context>

<pallas_src>
import functools
import math

import jax
import jax.numpy as jnp
from jax import lax
from jax.experimental import pallas as pl
from jax.experimental.pallas import tpu as pltpu


def _attn_kernel(x_ref, wqkv_ref, bqkv_ref, wout_ref, bout_ref, o_ref,
                 q_scr, k_scr, v_scr,
                 *, hidden_size, num_heads, head_size, q_tile, num_kv_blocks):
    H, nh, hd, blk, nblk = hidden_size, num_heads, head_size, q_tile, num_kv_blocks
    qi = pl.program_id(1)
    cdt = q_scr.dtype                      # compute dtype (bf16 or f32)
    scale = 1.0 / math.sqrt(hd)

    # ------------------------------------------------------------------
    # Once per batch element (first q tile): fused QKV projection, chunked
    # over KV-block-sized row slabs.  Q is pre-scaled by 1/sqrt(hd) and kept
    # lane-dense (S, H); V is lane-dense (S, H); K is stored transposed per
    # (head, kv-block) so the hot loop never transposes.
    # ------------------------------------------------------------------
    @pl.when(qi == 0)
    def _project_qkv():
        bq = bqkv_ref[:, 0:H].astype(jnp.float32)
        bk = bqkv_ref[:, H:2 * H].astype(jnp.float32)
        bv = bqkv_ref[:, 2 * H:3 * H].astype(jnp.float32)
        for jb in range(nblk):                       # static, chunk == kv block
            r0 = jb * blk
            x_c = x_ref[0, r0:r0 + blk, :]                           # (blk, H)
            q_c = jnp.dot(x_c, wqkv_ref[:, 0:H],
                          preferred_element_type=jnp.float32) + bq
            k_c = jnp.dot(x_c, wqkv_ref[:, H:2 * H],
                          preferred_element_type=jnp.float32) + bk
            v_c = jnp.dot(x_c, wqkv_ref[:, 2 * H:3 * H],
                          preferred_element_type=jnp.float32) + bv
            q_scr[r0:r0 + blk, :] = (q_c * scale).astype(cdt)
            v_scr[r0:r0 + blk, :] = v_c.astype(cdt)
            kT_c = jnp.transpose(k_c).astype(cdt)                    # (H, blk)
            for h in range(nh):
                k_scr[h, jb] = kT_c[h * hd:(h + 1) * hd, :]          # (hd, blk)

    # ------------------------------------------------------------------
    # Flash-style causal attention for this query tile.
    # ------------------------------------------------------------------
    q_start = pl.multiple_of(qi * blk, blk)

    # Static within-block mask; only the diagonal KV block needs it.
    row = lax.broadcasted_iota(jnp.int32, (blk, blk), 0)
    col = lax.broadcasted_iota(jnp.int32, (blk, blk), 1)
    diag_mask = row < col                                 # True -> future key
    neg_big = jnp.float32(-10000.0)

    def softmax_update(s, m, l):
        m_new = jnp.maximum(m, s.max(axis=-1, keepdims=True))
        alpha = jnp.exp(m - m_new)
        p = jnp.exp(s - m_new)
        l_new = alpha * l + p.sum(axis=-1, keepdims=True)
        return m_new, l_new, alpha, p

    attn_heads = []
    for h in range(nh):
        c0 = h * hd
        q_h = q_scr[pl.ds(q_start, blk), c0:c0 + hd]                 # (blk, hd)

        def kv_body(j, carry, c0=c0, q_h=q_h):
            m, l, acc = carry
            k_start = pl.multiple_of(j * blk, blk)
            kT = k_scr[h, j]                                         # (hd, blk)
            v_b = v_scr[pl.ds(k_start, blk), c0:c0 + hd]             # (blk, hd)
            s = jnp.dot(q_h, kT, preferred_element_type=jnp.float32)
            m_new, l_new, alpha, p = softmax_update(s, m, l)
            acc = alpha * acc + jnp.dot(p.astype(cdt), v_b,
                                        preferred_element_type=jnp.float32)
            return m_new, l_new, acc

        m0 = jnp.full((blk, 1), -jnp.inf, jnp.float32)
        l0 = jnp.zeros((blk, 1), jnp.float32)
        a0 = jnp.zeros((blk, hd), jnp.float32)
        # Off-diagonal causal blocks: fully unmasked, no compare/select.
        m, l, acc = lax.fori_loop(0, qi, kv_body, (m0, l0, a0))

        # Diagonal block: the only one that needs the causal mask.
        kT = k_scr[h, qi]                                            # (hd, blk)
        v_b = v_scr[pl.ds(q_start, blk), c0:c0 + hd]                 # (blk, hd)
        s = jnp.dot(q_h, kT, preferred_element_type=jnp.float32)
        s = jnp.where(diag_mask, neg_big, s)
        m, l, alpha, p = softmax_update(s, m, l)
        acc = alpha * acc + jnp.dot(p.astype(cdt), v_b,
                                    preferred_element_type=jnp.float32)

        inv_l = pl.reciprocal(l, approx=True)                        # EUP slot
        attn_heads.append((acc * inv_l).astype(cdt))                 # (blk, hd)

    # Lane-dense head concat + single full-contraction output projection.
    attn = jnp.concatenate(attn_heads, axis=-1)                      # (blk, H)
    out = jnp.dot(attn, wout_ref[...], preferred_element_type=jnp.float32)
    out = out + bout_ref[...].astype(jnp.float32)
    o_ref[0] = out.astype(o_ref.dtype)


def unidirectional_attention(x, w_qkv, b_qkv, w_out, b_out, *, num_heads,
                             q_block=256, compute_dtype=jnp.bfloat16,
                             vmem_limit_bytes=32 * 1024 * 1024):
    """Causal MHA matching the PyTorch module.

    x:     (B, S, H)
    w_qkv: (H, 3H)  stored [in, out]  (PyTorch Linear weight transposed)
    b_qkv: (1, 3H)
    w_out: (H, H)   stored [in, out]
    b_out: (1, H)

    q_block: query/KV tile size (128 recommended on v5e, 256-512 on v6e/v7x).
    compute_dtype: dtype fed to the MXU (bf16 default; f32 accumulation and
        f32 softmax statistics are always kept).
    vmem_limit_bytes: raise toward ~96 MiB on v5e/v6e for larger tiles /
        longer sequences; keep conservative on v7x (64 MiB physical VMEM).
    """
    B, S, H = x.shape
    assert H % num_heads == 0
    hd = H // num_heads
    blk = S if S <= q_block else q_block
    assert S % blk == 0, "seq_len must be divisible by the query tile"
    cdt = jnp.dtype(compute_dtype)
    sublane = 16 if cdt.itemsize < 4 else 8
    if blk != S:
        assert blk % sublane == 0, (
            f"query tile must be a multiple of {sublane} for {cdt} compute")
    n_blk = S // blk
    out_dtype = x.dtype

    # Cast MXU operands to the compute dtype outside the kernel (halves the
    # weight DMA + VMEM when bf16).  Biases stay as-is and are added in f32.
    x_c = x.astype(cdt)
    w_qkv_c = w_qkv.astype(cdt)
    w_out_c = w_out.astype(cdt)

    kernel = functools.partial(
        _attn_kernel, hidden_size=H, num_heads=num_heads, head_size=hd,
        q_tile=blk, num_kv_blocks=n_blk)

    single = pl.Buffered(1)   # constant-index operands: no double buffering

    return pl.pallas_call(
        kernel,
        out_shape=jax.ShapeDtypeStruct((B, S, H), out_dtype),
        grid=(B, n_blk),
        in_specs=[
            # x changes only with the batch index; keep default double
            # buffering so the next batch's activations prefetch behind the
            # last q tiles of the current one.
            pl.BlockSpec((1, S, H), lambda b, qi: (b, 0, 0)),
            pl.BlockSpec((H, 3 * H), lambda b, qi: (0, 0), pipeline_mode=single),
            pl.BlockSpec((1, 3 * H), lambda b, qi: (0, 0), pipeline_mode=single),
            pl.BlockSpec((H, H), lambda b, qi: (0, 0), pipeline_mode=single),
            pl.BlockSpec((1, H), lambda b, qi: (0, 0), pipeline_mode=single),
        ],
        out_specs=pl.BlockSpec((1, blk, H), lambda b, qi: (b, qi, 0)),
        scratch_shapes=[
            pltpu.VMEM((S, H), cdt),                        # Q slab (pre-scaled)
            pltpu.VMEM((num_heads, n_blk, hd, blk), cdt),   # K^T [head, kv-block]
            pltpu.VMEM((S, H), cdt),                        # V slab
        ],
        compiler_params=pltpu.CompilerParams(
            # Batch axis shards across TensorCores; the q-tile axis carries the
            # per-batch Q/K/V scratch so it must stay sequential.
            dimension_semantics=("parallel", "arbitrary"),
            vmem_limit_bytes=vmem_limit_bytes,
        ),
    )(x_c, w_qkv_c, b_qkv, w_out_c, b_out)


def _reference(x, w_qkv, b_qkv, w_out, b_out, num_heads):
    """Plain-JAX (f32) mirror of the PyTorch forward, for correctness checks."""
    B, S, H = x.shape
    hd = H // num_heads
    x = x.astype(jnp.float32)
    w_qkv = w_qkv.astype(jnp.float32)
    b_qkv = b_qkv.astype(jnp.float32)
    w_out = w_out.astype(jnp.float32)
    b_out = b_out.astype(jnp.float32)

    qkv = x @ w_qkv + b_qkv[0]
    q, k, v = jnp.split(qkv, 3, axis=-1)
    q = q.reshape(B, S, num_heads, hd).transpose(0, 2, 1, 3)
    k = k.reshape(B, S, num_heads, hd).transpose(0, 2, 1, 3)
    v = v.reshape(B, S, num_heads, hd).transpose(0, 2, 1, 3)
    scores = jnp.einsum('bhql,bhkl->bhqk', q, k) / math.sqrt(hd)
    mask = jnp.arange(S)[:, None] < jnp.arange(S)[None, :]
    scores = jnp.where(mask, -10000.0, scores)
    p = jax.nn.softmax(scores, axis=-1)
    o = jnp.einsum('bhqk,bhkl->bhql', p, v)
    o = o.transpose(0, 2, 1, 3).reshape(B, S, H)
    return o @ w_out + b_out[0]


def _run_case(batch, seq_len, hidden_size, num_heads, in_dtype, compute_dtype,
              q_block, tol, key):
    kx, kw1, kb1, kw2, kb2 = jax.random.split(key, 5)
    bound = 1.0 / math.sqrt(hidden_size)
    x = jax.random.normal(kx, (batch, seq_len, hidden_size), dtype=jnp.float32)
    w_qkv = jax.random.uniform(kw1, (hidden_size, 3 * hidden_size),
                               minval=-bound, maxval=bound, dtype=jnp.float32)
    b_qkv = jax.random.uniform(kb1, (1, 3 * hidden_size),
                               minval=-bound, maxval=bound, dtype=jnp.float32)
    w_out = jax.random.uniform(kw2, (hidden_size, hidden_size),
                               minval=-bound, maxval=bound, dtype=jnp.float32)
    b_out = jax.random.uniform(kb2, (1, hidden_size),
                               minval=-bound, maxval=bound, dtype=jnp.float32)

    out = unidirectional_attention(
        x.astype(in_dtype), w_qkv.astype(in_dtype), b_qkv.astype(in_dtype),
        w_out.astype(in_dtype), b_out.astype(in_dtype),
        num_heads=num_heads, q_block=q_block, compute_dtype=compute_dtype)
    out = jax.block_until_ready(out)

    ref = _reference(x, w_qkv, b_qkv, w_out, b_out, num_heads)
    assert out.shape == (batch, seq_len, hidden_size)
    err = jnp.max(jnp.abs(out.astype(jnp.float32) - ref))
    assert jnp.allclose(out.astype(jnp.float32), ref, atol=tol, rtol=tol), (
        f"max abs err {err} (in={in_dtype}, compute={compute_dtype}, "
        f"S={seq_len}, H={hidden_size})")


if __name__ == "__main__":
    key = jax.random.PRNGKey(0)
    # Toy shape implied by the module (batch=2, seq=8, hidden=32, heads=4),
    # exact-structure check with f32 compute.
    _run_case(2, 8, 32, 4, jnp.float32, jnp.float32, 256, 1e-2, key)
    # Multi-tile path (4 q tiles): diagonal-only masking, K^T layout,
    # single fused out-projection matmul — still f32 compute, tight tol.
    _run_case(2, 64, 128, 4, jnp.float32, jnp.float32, 16, 1e-2, key)
    # Default bf16 MXU path with f32 inputs (bf16 operands, f32 accumulation
    # and f32 softmax statistics).
    _run_case(2, 64, 128, 4, jnp.float32, jnp.bfloat16, 32, 1e-1, key)
    # bf16 end-to-end (bf16 inputs, bf16 compute, bf16 output).
    _run_case(2, 64, 128, 4, jnp.bfloat16, jnp.bfloat16, 16, 1e-1, key)
    print("KERNEL_OK")
</pallas_src>

<mosaic_0001>
module attributes {stable_mosaic.version = 11 : i64} {
  func.func @_attn_kernel(%arg0: i32, %arg1: i32, %arg2: memref<1x8x32xf32, #tpu.memory_space<vmem>>, %arg3: memref<32x96xf32, #tpu.memory_space<vmem>>, %arg4: memref<1x96xf32, #tpu.memory_space<vmem>>, %arg5: memref<32x32xf32, #tpu.memory_space<vmem>>, %arg6: memref<1x32xf32, #tpu.memory_space<vmem>>, %arg7: memref<1x8x32xf32, #tpu.memory_space<vmem>>, %arg8: memref<8x32xf32, #tpu.memory_space<vmem>>, %arg9: memref<4x1x8x8xf32, #tpu.memory_space<vmem>>, %arg10: memref<8x32xf32, #tpu.memory_space<vmem>>) attributes {dimension_semantics = [#tpu.dimension_semantics<parallel>, #tpu.dimension_semantics<arbitrary>], iteration_bounds = array<i64: 2, 1>, scalar_prefetch = 0 : i64, scratch_operands = 3 : i64, tpu.core_type = #tpu.core_type<tc>, window_params = [{transform_indices = @transform_0, window_bounds = array<i64: 1, 8, 32>}, {pipeline_mode = #tpu.pipeline_mode<synchronous>, transform_indices = @transform_1, window_bounds = array<i64: 32, 96>}, {pipeline_mode = #tpu.pipeline_mode<synchronous>, transform_indices = @transform_2, window_bounds = array<i64: 1, 96>}, {pipeline_mode = #tpu.pipeline_mode<synchronous>, transform_indices = @transform_3, window_bounds = array<i64: 32, 32>}, {pipeline_mode = #tpu.pipeline_mode<synchronous>, transform_indices = @transform_4, window_bounds = array<i64: 1, 32>}, {transform_indices = @transform_5, window_bounds = array<i64: 1, 8, 32>}]} {
    %c0_i32 = arith.constant 0 : i32
    %0 = arith.cmpi eq, %arg1, %c0_i32 : i32
    %1 = arith.extui %0 : i1 to i32
    %c0_i32_0 = arith.constant 0 : i32
    %2 = arith.cmpi ne, %1, %c0_i32_0 : i32
    scf.if %2 {
      %c0_60 = arith.constant 0 : index
      %c0_61 = arith.constant 0 : index
      %157 = vector.load %arg4[%c0_60, %c0_61] : memref<1x96xf32, #tpu.memory_space<vmem>>, vector<1x32xf32>
      %c0_62 = arith.constant 0 : index
      %c32 = arith.constant 32 : index
      %158 = vector.load %arg4[%c0_62, %c32] : memref<1x96xf32, #tpu.memory_space<vmem>>, vector<1x32xf32>
      %c0_63 = arith.constant 0 : index
      %c64 = arith.constant 64 : index
      %159 = vector.load %arg4[%c0_63, %c64] : memref<1x96xf32, #tpu.memory_space<vmem>>, vector<1x32xf32>
      %c0_64 = arith.constant 0 : index
      %c0_65 = arith.constant 0 : index
      %c0_66 = arith.constant 0 : index
      %160 = vector.load %arg2[%c0_64, %c0_65, %c0_66] : memref<1x8x32xf32, #tpu.memory_space<vmem>>, vector<1x8x32xf32>
      %161 = vector.shape_cast %160 : vector<1x8x32xf32> to vector<8x32xf32>
      %c0_67 = arith.constant 0 : index
      %c0_68 = arith.constant 0 : index
      %162 = vector.load %arg3[%c0_67, %c0_68] : memref<32x96xf32, #tpu.memory_space<vmem>>, vector<32x32xf32>
      %cst_69 = arith.constant dense<0.000000e+00> : vector<8x32xf32>
      %163 = tpu.matmul %161, %162, %cst_69 {dimension_numbers = #tpu.dot_dimension_numbers<[1], [0], [0], [1], [0, 0, 1, 1], [], []>} : vector<8x32xf32>, vector<32x32xf32>, vector<8x32xf32> -> vector<8x32xf32>
      %164 = vector.broadcast %157 : vector<1x32xf32> to vector<8x32xf32>
      %165 = arith.addf %163, %164 : vector<8x32xf32>
      %c0_70 = arith.constant 0 : index
      %c32_71 = arith.constant 32 : index
      %166 = vector.load %arg3[%c0_70, %c32_71] : memref<32x96xf32, #tpu.memory_space<vmem>>, vector<32x32xf32>
      %cst_72 = arith.constant dense<0.000000e+00> : vector<8x32xf32>
      %167 = tpu.matmul %161, %166, %cst_72 {dimension_numbers = #tpu.dot_dimension_numbers<[1], [0], [0], [1], [0, 0, 1, 1], [], []>} : vector<8x32xf32>, vector<32x32xf32>, vector<8x32xf32> -> vector<8x32xf32>
      %168 = vector.broadcast %158 : vector<1x32xf32> to vector<8x32xf32>
      %169 = arith.addf %167, %168 : vector<8x32xf32>
      %c0_73 = arith.constant 0 : index
      %c64_74 = arith.constant 64 : index
      %170 = vector.load %arg3[%c0_73, %c64_74] : memref<32x96xf32, #tpu.memory_space<vmem>>, vector<32x32xf32>
      %cst_75 = arith.constant dense<0.000000e+00> : vector<8x32xf32>
      %171 = tpu.matmul %161, %170, %cst_75 {dimension_numbers = #tpu.dot_dimension_numbers<[1], [0], [0], [1], [0, 0, 1, 1], [], []>} : vector<8x32xf32>, vector<32x32xf32>, vector<8x32xf32> -> vector<8x32xf32>
      %172 = vector.broadcast %159 : vector<1x32xf32> to vector<8x32xf32>
      %173 = arith.addf %171, %172 : vector<8x32xf32>
      %cst_76 = arith.constant 0.353553385 : f32
      %174 = vector.broadcast %cst_76 : f32 to vector<8x32xf32>
      %175 = arith.mulf %165, %174 : vector<8x32xf32>
      %c0_77 = arith.constant 0 : index
      %c0_78 = arith.constant 0 : index
      %176 = vector.load %arg8[%c0_77, %c0_78] : memref<8x32xf32, #tpu.memory_space<vmem>>, vector<8x32xf32>
      tpu.vector_store %arg8[%c0_77, %c0_78], %175 {strides = array<i32>} : memref<8x32xf32, #tpu.memory_space<vmem>>, vector<8x32xf32>,
      %c0_79 = arith.constant 0 : index
      %c0_80 = arith.constant 0 : index
      %177 = vector.load %arg10[%c0_79, %c0_80] : memref<8x32xf32, #tpu.memory_space<vmem>>, vector<8x32xf32>
      tpu.vector_store %arg10[%c0_79, %c0_80], %173 {strides = array<i32>} : memref<8x32xf32, #tpu.memory_space<vmem>>, vector<8x32xf32>,
      %178 = tpu.transpose %169, [1, 0] : vector<8x32xf32> -> vector<32x8xf32>
      %179 = vector.extract_strided_slice %178 {offsets = [0, 0], sizes = [8, 8], strides = [1, 1]} : vector<32x8xf32> to vector<8x8xf32>
      %c0_81 = arith.constant 0 : index
      %c0_82 = arith.constant 0 : index
      %c0_83 = arith.constant 0 : index
      %c0_84 = arith.constant 0 : index
      %180 = vector.load %arg9[%c0_81, %c0_82, %c0_83, %c0_84] : memref<4x1x8x8xf32, #tpu.memory_space<vmem>>, vector<1x1x8x8xf32>
      %181 = vector.shape_cast %180 : vector<1x1x8x8xf32> to vector<8x8xf32>
      %182 = vector.shape_cast %179 : vector<8x8xf32> to vector<1x1x8x8xf32>
      tpu.vector_store %arg9[%c0_81, %c0_82, %c0_83, %c0_84], %182 {strides = array<i32>} : memref<4x1x8x8xf32, #tpu.memory_space<vmem>>, vector<1x1x8x8xf32>,
      %183 = vector.extract_strided_slice %178 {offsets = [8, 0], sizes = [8, 8], strides = [1, 1]} : vector<32x8xf32> to vector<8x8xf32>
      %c1_85 = arith.constant 1 : index
      %c0_86 = arith.constant 0 : index
      %c0_87 = arith.constant 0 : index
      %c0_88 = arith.constant 0 : index
      %184 = vector.load %arg9[%c1_85, %c0_86, %c0_87, %c0_88] : memref<4x1x8x8xf32, #tpu.memory_space<vmem>>, vector<1x1x8x8xf32>
      %185 = vector.shape_cast %184 : vector<1x1x8x8xf32> to vector<8x8xf32>
      %186 = vector.shape_cast %183 : vector<8x8xf32> to vector<1x1x8x8xf32>
      tpu.vector_store %arg9[%c1_85, %c0_86, %c0_87, %c0_88], %186 {strides = array<i32>} : memref<4x1x8x8xf32, #tpu.memory_space<vmem>>, vector<1x1x8x8xf32>,
      %187 = vector.extract_strided_slice %178 {offsets = [16, 0], sizes = [8, 8], strides = [1, 1]} : vector<32x8xf32> to vector<8x8xf32>
      %c2_89 = arith.constant 2 : index
      %c0_90 = arith.constant 0 : index
      %c0_91 = arith.constant 0 : index
      %c0_92 = arith.constant 0 : index
      %188 = vector.load %arg9[%c2_89, %c0_90, %c0_91, %c0_92] : memref<4x1x8x8xf32, #tpu.memory_space<vmem>>, vector<1x1x8x8xf32>
      %189 = vector.shape_cast %188 : vector<1x1x8x8xf32> to vector<8x8xf32>
      %190 = vector.shape_cast %187 : vector<8x8xf32> to vector<1x1x8x8xf32>
      tpu.vector_store %arg9[%c2_89, %c0_90, %c0_91, %c0_92], %190 {strides = array<i32>} : memref<4x1x8x8xf32, #tpu.memory_space<vmem>>, vector<1x1x8x8xf32>,
      %191 = vector.extract_strided_slice %178 {offsets = [24, 0], sizes = [8, 8], strides = [1, 1]} : vector<32x8xf32> to vector<8x8xf32>
      %c3_93 = arith.constant 3 : index
      %c0_94 = arith.constant 0 : index
      %c0_95 = arith.constant 0 : index
      %c0_96 = arith.constant 0 : index
      %192 = vector.load %arg9[%c3_93, %c0_94, %c0_95, %c0_96] : memref<4x1x8x8xf32, #tpu.memory_space<vmem>>, vector<1x1x8x8xf32>
      %193 = vector.shape_cast %192 : vector<1x1x8x8xf32> to vector<8x8xf32>
      %194 = vector.shape_cast %191 : vector<8x8xf32> to vector<1x1x8x8xf32>
      tpu.vector_store %arg9[%c3_93, %c0_94, %c0_95, %c0_96], %194 {strides = array<i32>} : memref<4x1x8x8xf32, #tpu.memory_space<vmem>>, vector<1x1x8x8xf32>,
    } else {
    }
    %c8_i32 = arith.constant 8 : i32
    %3 = arith.muli %arg1, %c8_i32 : i32
    %4 = tpu.assume_multiple %3, 8 : i32
    %5 = tpu.iota {dimensions = array<i32: 0>} : vector<8x8xi32>
    %6 = tpu.iota {dimensions = array<i32: 1>} : vector<8x8xi32>
    %7 = arith.cmpi slt, %5, %6 : vector<8x8xi32>
    %8 = arith.index_cast %4 : i32 to index
    %c0 = arith.constant 0 : index
    %9 = vector.load %arg8[%8, %c0] : memref<8x32xf32, #tpu.memory_space<vmem>>, vector<8x8xf32>
    %cst = arith.constant 0xFF800000 : f32
    %10 = vector.broadcast %cst : f32 to vector<8x1xf32>
    %cst_1 = arith.constant 0.000000e+00 : f32
    %11 = vector.broadcast %cst_1 : f32 to vector<8x1xf32>
    %cst_2 = arith.constant 0.000000e+00 : f32
    %12 = vector.broadcast %cst_2 : f32 to vector<8x8xf32>
    %c0_i32_3 = arith.constant 0 : i32
    %13 = arith.subi %arg1, %c0_i32_3 : i32
    %14 = arith.addi %c0_i32_3, %13 : i32
    %c1_i32 = arith.constant 1 : i32
    %15:3 = scf.for %arg11 = %c0_i32_3 to %14 step %c1_i32 iter_args(%arg12 = %10, %arg13 = %11, %arg14 = %12) -> (vector<8x1xf32>, vector<8x1xf32>, vector<8x8xf32>)  : i32 {
      %c8_i32_60 = arith.constant 8 : i32
      %157 = arith.muli %arg11, %c8_i32_60 : i32
      %158 = tpu.assume_multiple %157, 8 : i32
      %c0_61 = arith.constant 0 : index
      %159 = arith.index_cast %arg11 : i32 to index
      %c0_62 = arith.constant 0 : index
      %c0_63 = arith.constant 0 : index
      %160 = vector.load %arg9[%c0_61, %159, %c0_62, %c0_63] : memref<4x1x8x8xf32, #tpu.memory_space<vmem>>, vector<1x1x8x8xf32>
      %161 = vector.shape_cast %160 : vector<1x1x8x8xf32> to vector<8x8xf32>
      %162 = arith.index_cast %158 : i32 to index
      %c0_64 = arith.constant 0 : index
      %163 = vector.load %arg10[%162, %c0_64] : memref<8x32xf32, #tpu.memory_space<vmem>>, vector<8x8xf32>
      %cst_65 = arith.constant dense<0.000000e+00> : vector<8x8xf32>
      %164 = tpu.matmul %9, %161, %cst_65 {dimension_numbers = #tpu.dot_dimension_numbers<[1], [0], [0], [1], [0, 0, 1, 1], [], []>} : vector<8x8xf32>, vector<8x8xf32>, vector<8x8xf32> -> vector<8x8xf32>
      %cst_66 = arith.constant dense<0xFF800000> : vector<8xf32>
      %165 = vector.multi_reduction <maximumf>, %164, %cst_66 [1] : vector<8x8xf32> to vector<8xf32>
      %166 = vector.shape_cast %165 : vector<8xf32> to vector<8x1xf32>
      %167 = arith.maximumf %arg12, %166 : vector<8x1xf32>
      %168 = arith.subf %arg12, %167 : vector<8x1xf32>
      %169 = math.exp %168 : vector<8x1xf32>
      %170 = vector.broadcast %167 : vector<8x1xf32> to vector<8x8xf32>
      %171 = arith.subf %164, %170 : vector<8x8xf32>
      %172 = math.exp %171 : vector<8x8xf32>
      %173 = arith.mulf %169, %arg13 : vector<8x1xf32>
      %cst_67 = arith.constant dense<0.000000e+00> : vector<8xf32>
      %174 = vector.multi_reduction <add>, %172, %cst_67 [1] : vector<8x8xf32> to vector<8xf32>
      %175 = vector.shape_cast %174 : vector<8xf32> to vector<8x1xf32>
      %176 = arith.addf %173, %175 : vector<8x1xf32>
      %177 = vector.broadcast %169 : vector<8x1xf32> to vector<8x8xf32>
      %178 = arith.mulf %177, %arg14 : vector<8x8xf32>
      %cst_68 = arith.constant dense<0.000000e+00> : vector<8x8xf32>
      %179 = tpu.matmul %172, %163, %cst_68 {dimension_numbers = #tpu.dot_dimension_numbers<[1], [0], [0], [1], [0, 0, 1, 1], [], []>} : vector<8x8xf32>, vector<8x8xf32>, vector<8x8xf32> -> vector<8x8xf32>
      %180 = arith.addf %178, %179 : vector<8x8xf32>
      scf.yield %167, %176, %180 : vector<8x1xf32>, vector<8x1xf32>, vector<8x8xf32>
    }
    %c0_4 = arith.constant 0 : index
    %16 = arith.index_cast %arg1 : i32 to index
    %c0_5 = arith.constant 0 : index
    %c0_6 = arith.constant 0 : index
    %17 = vector.load %arg9[%c0_4, %16, %c0_5, %c0_6] : memref<4x1x8x8xf32, #tpu.memory_space<vmem>>, vector<1x1x8x8xf32>
    %18 = vector.shape_cast %17 : vector<1x1x8x8xf32> to vector<8x8xf32>
    %19 = arith.index_cast %4 : i32 to index
    %c0_7 = arith.constant 0 : index
    %20 = vector.load %arg10[%19, %c0_7] : memref<8x32xf32, #tpu.memory_space<vmem>>, vector<8x8xf32>
    %cst_8 = arith.constant dense<0.000000e+00> : vector<8x8xf32>
    %21 = tpu.matmul %9, %18, %cst_8 {dimension_numbers = #tpu.dot_dimension_numbers<[1], [0], [0], [1], [0, 0, 1, 1], [], []>} : vector<8x8xf32>, vector<8x8xf32>, vector<8x8xf32> -> vector<8x8xf32>
    %cst_9 = arith.constant -1.000000e+04 : f32
    %22 = vector.broadcast %cst_9 : f32 to vector<8x8xf32>
    %23 = arith.select %7, %22, %21 : vector<8x8xi1>, vector<8x8xf32>
    %cst_10 = arith.constant dense<0xFF800000> : vector<8xf32>
    %24 = vector.multi_reduction <maximumf>, %23, %cst_10 [1] : vector<8x8xf32> to vector<8xf32>
    %25 = vector.shape_cast %24 : vector<8xf32> to vector<8x1xf32>
    %26 = arith.maximumf %15#0, %25 : vector<8x1xf32>
    %27 = arith.subf %15#0, %26 : vector<8x1xf32>
    %28 = math.exp %27 : vector<8x1xf32>
    %29 = vector.broadcast %26 : vector<8x1xf32> to vector<8x8xf32>
    %30 = arith.subf %23, %29 : vector<8x8xf32>
    %31 = math.exp %30 : vector<8x8xf32>
    %32 = arith.mulf %28, %15#1 : vector<8x1xf32>
    %cst_11 = arith.constant dense<0.000000e+00> : vector<8xf32>
    %33 = vector.multi_reduction <add>, %31, %cst_11 [1] : vector<8x8xf32> to vector<8xf32>
    %34 = vector.shape_cast %33 : vector<8xf32> to vector<8x1xf32>
    %35 = arith.addf %32, %34 : vector<8x1xf32>
    %36 = vector.broadcast %28 : vector<8x1xf32> to vector<8x8xf32>
    %37 = arith.mulf %36, %15#2 : vector<8x8xf32>
    %cst_12 = arith.constant dense<0.000000e+00> : vector<8x8xf32>
    %38 = tpu.matmul %31, %20, %cst_12 {dimension_numbers = #tpu.dot_dimension_numbers<[1], [0], [0], [1], [0, 0, 1, 1], [], []>} : vector<8x8xf32>, vector<8x8xf32>, vector<8x8xf32> -> vector<8x8xf32>
    %39 = arith.addf %37, %38 : vector<8x8xf32>
    %40 = tpu.reciprocal %35 {approx = true} : vector<8x1xf32> -> vector<8x1xf32>
    %41 = vector.broadcast %40 : vector<8x1xf32> to vector<8x8xf32>
    %42 = arith.mulf %39, %41 : vector<8x8xf32>
    %43 = arith.index_cast %4 : i32 to index
    %c8 = arith.constant 8 : index
    %44 = vector.load %arg8[%43, %c8] : memref<8x32xf32, #tpu.memory_space<vmem>>, vector<8x8xf32>
    %cst_13 = arith.constant 0xFF800000 : f32
    %45 = vector.broadcast %cst_13 : f32 to vector<8x1xf32>
    %cst_14 = arith.constant 0.000000e+00 : f32
    %46 = vector.broadcast %cst_14 : f32 to vector<8x1xf32>
    %cst_15 = arith.constant 0.000000e+00 : f32
    %47 = vector.broadcast %cst_15 : f32 to vector<8x8xf32>
    %c0_i32_16 = arith.constant 0 : i32
    %48 = arith.subi %arg1, %c0_i32_16 : i32
    %49 = arith.addi %c0_i32_16, %48 : i32
    %c1_i32_17 = arith.constant 1 : i32
    %50:3 = scf.for %arg11 = %c0_i32_16 to %49 step %c1_i32_17 iter_args(%arg12 = %45, %arg13 = %46, %arg14 = %47) -> (vector<8x1xf32>, vector<8x1xf32>, vector<8x8xf32>)  : i32 {
      %c8_i32_60 = arith.constant 8 : i32
      %157 = arith.muli %arg11, %c8_i32_60 : i32
      %158 = tpu.assume_multiple %157, 8 : i32
      %c1_61 = arith.constant 1 : index
      %159 = arith.index_cast %arg11 : i32 to index
      %c0_62 = arith.constant 0 : index
      %c0_63 = arith.constant 0 : index
      %160 = vector.load %arg9[%c1_61, %159, %c0_62, %c0_63] : memref<4x1x8x8xf32, #tpu.memory_space<vmem>>, vector<1x1x8x8xf32>
      %161 = vector.shape_cast %160 : vector<1x1x8x8xf32> to vector<8x8xf32>
      %162 = arith.index_cast %158 : i32 to index
      %c8_64 = arith.constant 8 : index
      %163 = vector.load %arg10[%162, %c8_64] : memref<8x32xf32, #tpu.memory_space<vmem>>, vector<8x8xf32>
      %cst_65 = arith.constant dense<0.000000e+00> : vector<8x8xf32>
      %164 = tpu.matmul %44, %161, %cst_65 {dimension_numbers = #tpu.dot_dimension_numbers<[1], [0], [0], [1], [0, 0, 1, 1], [], []>} : vector<8x8xf32>, vector<8x8xf32>, vector<8x8xf32> -> vector<8x8xf32>
      %cst_66 = arith.constant dense<0xFF800000> : vector<8xf32>
      %165 = vector.multi_reduction <maximumf>, %164, %cst_66 [1] : vector<8x8xf32> to vector<8xf32>
      %166 = vector.shape_cast %165 : vector<8xf32> to vector<8x1xf32>
      %167 = arith.maximumf %arg12, %166 : vector<8x1xf32>
      %168 = arith.subf %arg12, %167 : vector<8x1xf32>
      %169 = math.exp %168 : vector<8x1xf32>
      %170 = vector.broadcast %167 : vector<8x1xf32> to vector<8x8xf32>
      %171 = arith.subf %164, %170 : vector<8x8xf32>
      %172 = math.exp %171 : vector<8x8xf32>
      %173 = arith.mulf %169, %arg13 : vector<8x1xf32>
      %cst_67 = arith.constant dense<0.000000e+00> : vector<8xf32>
      %174 = vector.multi_reduction <add>, %172, %cst_67 [1] : vector<8x8xf32> to vector<8xf32>
      %175 = vector.shape_cast %174 : vector<8xf32> to vector<8x1xf32>
      %176 = arith.addf %173, %175 : vector<8x1xf32>
      %177 = vector.broadcast %169 : vector<8x1xf32> to vector<8x8xf32>
      %178 = arith.mulf %177, %arg14 : vector<8x8xf32>
      %cst_68 = arith.constant dense<0.000000e+00> : vector<8x8xf32>
      %179 = tpu.matmul %172, %163, %cst_68 {dimension_numbers = #tpu.dot_dimension_numbers<[1], [0], [0], [1], [0, 0, 1, 1], [], []>} : vector<8x8xf32>, vector<8x8xf32>, vector<8x8xf32> -> vector<8x8xf32>
      %180 = arith.addf %178, %179 : vector<8x8xf32>
      scf.yield %167, %176, %180 : vector<8x1xf32>, vector<8x1xf32>, vector<8x8xf32>
    }
    %c1 = arith.constant 1 : index
    %51 = arith.index_cast %arg1 : i32 to index
    %c0_18 = arith.constant 0 : index
    %c0_19 = arith.constant 0 : index
    %52 = vector.load %arg9[%c1, %51, %c0_18, %c0_19] : memref<4x1x8x8xf32, #tpu.memory_space<vmem>>, vector<1x1x8x8xf32>
    %53 = vector.shape_cast %52 : vector<1x1x8x8xf32> to vector<8x8xf32>
    %54 = arith.index_cast %4 : i32 to index
    %c8_20 = arith.constant 8 : index
    %55 = vector.load %arg10[%54, %c8_20] : memref<8x32xf32, #tpu.memory_space<vmem>>, vector<8x8xf32>
    %cst_21 = arith.constant dense<0.000000e+00> : vector<8x8xf32>
    %56 = tpu.matmul %44, %53, %cst_21 {dimension_numbers = #tpu.dot_dimension_numbers<[1], [0], [0], [1], [0, 0, 1, 1], [], []>} : vector<8x8xf32>, vector<8x8xf32>, vector<8x8xf32> -> vector<8x8xf32>
    %cst_22 = arith.constant -1.000000e+04 : f32
    %57 = vector.broadcast %cst_22 : f32 to vector<8x8xf32>
    %58 = arith.select %7, %57, %56 : vector<8x8xi1>, vector<8x8xf32>
    %cst_23 = arith.constant dense<0xFF800000> : vector<8xf32>
    %59 = vector.multi_reduction <maximumf>, %58, %cst_23 [1] : vector<8x8xf32> to vector<8xf32>
    %60 = vector.shape_cast %59 : vector<8xf32> to vector<8x1xf32>
    %61 = arith.maximumf %50#0, %60 : vector<8x1xf32>
    %62 = arith.subf %50#0, %61 : vector<8x1xf32>
    %63 = math.exp %62 : vector<8x1xf32>
    %64 = vector.broadcast %61 : vector<8x1xf32> to vector<8x8xf32>
    %65 = arith.subf %58, %64 : vector<8x8xf32>
    %66 = math.exp %65 : vector<8x8xf32>
    %67 = arith.mulf %63, %50#1 : vector<8x1xf32>
    %cst_24 = arith.constant dense<0.000000e+00> : vector<8xf32>
    %68 = vector.multi_reduction <add>, %66, %cst_24 [1] : vector<8x8xf32> to vector<8xf32>
    %69 = vector.shape_cast %68 : vector<8xf32> to vector<8x1xf32>
    %70 = arith.addf %67, %69 : vector<8x1xf32>
    %71 = vector.broadcast %63 : vector<8x1xf32> to vector<8x8xf32>
    %72 = arith.mulf %71, %50#2 : vector<8x8xf32>
    %cst_25 = arith.constant dense<0.000000e+00> : vector<8x8xf32>
    %73 = tpu.matmul %66, %55, %cst_25 {dimension_numbers = #tpu.dot_dimension_numbers<[1], [0], [0], [1], [0, 0, 1, 1], [], []>} : vector<8x8xf32>, vector<8x8xf32>, vector<8x8xf32> -> vector<8x8xf32>
    %74 = arith.addf %72, %73 : vector<8x8xf32>
    %75 = tpu.reciprocal %70 {approx = true} : vector<8x1xf32> -> vector<8x1xf32>
    %76 = vector.broadcast %75 : vector<8x1xf32> to vector<8x8xf32>
    %77 = arith.mulf %74, %76 : vector<8x8xf32>
    %78 = arith.index_cast %4 : i32 to index
    %c16 = arith.constant 16 : index
    %79 = vector.load %arg8[%78, %c16] : memref<8x32xf32, #tpu.memory_space<vmem>>, vector<8x8xf32>
    %cst_26 = arith.constant 0xFF800000 : f32
    %80 = vector.broadcast %cst_26 : f32 to vector<8x1xf32>
    %cst_27 = arith.constant 0.000000e+00 : f32
    %81 = vector.broadcast %cst_27 : f32 to vector<8x1xf32>
    %cst_28 = arith.constant 0.000000e+00 : f32
    %82 = vector.broadcast %cst_28 : f32 to vector<8x8xf32>
    %c0_i32_29 = arith.constant 0 : i32
    %83 = arith.subi %arg1, %c0_i32_29 : i32
    %84 = arith.addi %c0_i32_29, %83 : i32
    %c1_i32_30 = arith.constant 1 : i32
    %85:3 = scf.for %arg11 = %c0_i32_29 to %84 step %c1_i32_30 iter_args(%arg12 = %80, %arg13 = %81, %arg14 = %82) -> (vector<8x1xf32>, vector<8x1xf32>, vector<8x8xf32>)  : i32 {
      %c8_i32_60 = arith.constant 8 : i32
      %157 = arith.muli %arg11, %c8_i32_60 : i32
      %158 = tpu.assume_multiple %157, 8 : i32
      %c2_61 = arith.constant 2 : index
      %159 = arith.index_cast %arg11 : i32 to index
      %c0_62 = arith.constant 0 : index
      %c0_63 = arith.constant 0 : index
      %160 = vector.load %arg9[%c2_61, %159, %c0_62, %c0_63] : memref<4x1x8x8xf32, #tpu.memory_space<vmem>>, vector<1x1x8x8xf32>
      %161 = vector.shape_cast %160 : vector<1x1x8x8xf32> to vector<8x8xf32>
      %162 = arith.index_cast %158 : i32 to index
      %c16_64 = arith.constant 16 : index
      %163 = vector.load %arg10[%162, %c16_64] : memref<8x32xf32, #tpu.memory_space<vmem>>, vector<8x8xf32>
      %cst_65 = arith.constant dense<0.000000e+00> : vector<8x8xf32>
      %164 = tpu.matmul %79, %161, %cst_65 {dimension_numbers = #tpu.dot_dimension_numbers<[1], [0], [0], [1], [0, 0, 1, 1], [], []>} : vector<8x8xf32>, vector<8x8xf32>, vector<8x8xf32> -> vector<8x8xf32>
      %cst_66 = arith.constant dense<0xFF800000> : vector<8xf32>
      %165 = vector.multi_reduction <maximumf>, %164, %cst_66 [1] : vector<8x8xf32> to vector<8xf32>
      %166 = vector.shape_cast %165 : vector<8xf32> to vector<8x1xf32>
      %167 = arith.maximumf %arg12, %166 : vector<8x1xf32>
      %168 = arith.subf %arg12, %167 : vector<8x1xf32>
      %169 = math.exp %168 : vector<8x1xf32>
      %170 = vector.broadcast %167 : vector<8x1xf32> to vector<8x8xf32>
      %171 = arith.subf %164, %170 : vector<8x8xf32>
      %172 = math.exp %171 : vector<8x8xf32>
      %173 = arith.mulf %169, %arg13 : vector<8x1xf32>
      %cst_67 = arith.constant dense<0.000000e+00> : vector<8xf32>
      %174 = vector.multi_reduction <add>, %172, %cst_67 [1] : vector<8x8xf32> to vector<8xf32>
      %175 = vector.shape_cast %174 : vector<8xf32> to vector<8x1xf32>
      %176 = arith.addf %173, %175 : vector<8x1xf32>
      %177 = vector.broadcast %169 : vector<8x1xf32> to vector<8x8xf32>
      %178 = arith.mulf %177, %arg14 : vector<8x8xf32>
      %cst_68 = arith.constant dense<0.000000e+00> : vector<8x8xf32>
      %179 = tpu.matmul %172, %163, %cst_68 {dimension_numbers = #tpu.dot_dimension_numbers<[1], [0], [0], [1], [0, 0, 1, 1], [], []>} : vector<8x8xf32>, vector<8x8xf32>, vector<8x8xf32> -> vector<8x8xf32>
      %180 = arith.addf %178, %179 : vector<8x8xf32>
      scf.yield %167, %176, %180 : vector<8x1xf32>, vector<8x1xf32>, vector<8x8xf32>
    }
    %c2 = arith.constant 2 : index
    %86 = arith.index_cast %arg1 : i32 to index
    %c0_31 = arith.constant 0 : index
    %c0_32 = arith.constant 0 : index
    %87 = vector.load %arg9[%c2, %86, %c0_31, %c0_32] : memref<4x1x8x8xf32, #tpu.memory_space<vmem>>, vector<1x1x8x8xf32>
    %88 = vector.shape_cast %87 : vector<1x1x8x8xf32> to vector<8x8xf32>
    %89 = arith.index_cast %4 : i32 to index
    %c16_33 = arith.constant 16 : index
    %90 = vector.load %arg10[%89, %c16_33] : memref<8x32xf32, #tpu.memory_space<vmem>>, vector<8x8xf32>
    %cst_34 = arith.constant dense<0.000000e+00> : vector<8x8xf32>
    %91 = tpu.matmul %79, %88, %cst_34 {dimension_numbers = #tpu.dot_dimension_numbers<[1], [0], [0], [1], [0, 0, 1, 1], [], []>} : vector<8x8xf32>, vector<8x8xf32>, vector<8x8xf32> -> vector<8x8xf32>
    %cst_35 = arith.constant -1.000000e+04 : f32
    %92 = vector.broadcast %cst_35 : f32 to vector<8x8xf32>
    %93 = arith.select %7, %92, %91 : vector<8x8xi1>, vector<8x8xf32>
    %cst_36 = arith.constant dense<0xFF800000> : vector<8xf32>
    %94 = vector.multi_reduction <maximumf>, %93, %cst_36 [1] : vector<8x8xf32> to vector<8xf32>
    %95 = vector.shape_cast %94 : vector<8xf32> to vector<8x1xf32>
    %96 = arith.maximumf %85#0, %95 : vector<8x1xf32>
    %97 = arith.subf %85#0, %96 : vector<8x1xf32>
    %98 = math.exp %97 : vector<8x1xf32>
    %99 = vector.broadcast %96 : vector<8x1xf32> to vector<8x8xf32>
    %100 = arith.subf %93, %99 : vector<8x8xf32>
    %101 = math.exp %100 : vector<8x8xf32>
    %102 = arith.mulf %98, %85#1 : vector<8x1xf32>
    %cst_37 = arith.constant dense<0.000000e+00> : vector<8xf32>
    %103 = vector.multi_reduction <add>, %101, %cst_37 [1] : vector<8x8xf32> to vector<8xf32>
    %104 = vector.shape_cast %103 : vector<8xf32> to vector<8x1xf32>
    %105 = arith.addf %102, %104 : vector<8x1xf32>
    %106 = vector.broadcast %98 : vector<8x1xf32> to vector<8x8xf32>
    %107 = arith.mulf %106, %85#2 : vector<8x8xf32>
    %cst_38 = arith.constant dense<0.000000e+00> : vector<8x8xf32>
    %108 = tpu.matmul %101, %90, %cst_38 {dimension_numbers = #tpu.dot_dimension_numbers<[1], [0], [0], [1], [0, 0, 1, 1], [], []>} : vector<8x8xf32>, vector<8x8xf32>, vector<8x8xf32> -> vector<8x8xf32>
    %109 = arith.addf %107, %108 : vector<8x8xf32>
    %110 = tpu.reciprocal %105 {approx = true} : vector<8x1xf32> -> vector<8x1xf32>
    %111 = vector.broadcast %110 : vector<8x1xf32> to vector<8x8xf32>
    %112 = arith.mulf %109, %111 : vector<8x8xf32>
    %113 = arith.index_cast %4 : i32 to index
    %c24 = arith.constant 24 : index
    %114 = vector.load %arg8[%113, %c24] : memref<8x32xf32, #tpu.memory_space<vmem>>, vector<8x8xf32>
    %cst_39 = arith.constant 0xFF800000 : f32
    %115 = vector.broadcast %cst_39 : f32 to vector<8x1xf32>
    %cst_40 = arith.constant 0.000000e+00 : f32
    %116 = vector.broadcast %cst_40 : f32 to vector<8x1xf32>
    %cst_41 = arith.constant 0.000000e+00 : f32
    %117 = vector.broadcast %cst_41 : f32 to vector<8x8xf32>
    %c0_i32_42 = arith.constant 0 : i32
    %118 = arith.subi %arg1, %c0_i32_42 : i32
    %119 = arith.addi %c0_i32_42, %118 : i32
    %c1_i32_43 = arith.constant 1 : i32
    %120:3 = scf.for %arg11 = %c0_i32_42 to %119 step %c1_i32_43 iter_args(%arg12 = %115, %arg13 = %116, %arg14 = %117) -> (vector<8x1xf32>, vector<8x1xf32>, vector<8x8xf32>)  : i32 {
      %c8_i32_60 = arith.constant 8 : i32
      %157 = arith.muli %arg11, %c8_i32_60 : i32
      %158 = tpu.assume_multiple %157, 8 : i32
      %c3_61 = arith.constant 3 : index
      %159 = arith.index_cast %arg11 : i32 to index
      %c0_62 = arith.constant 0 : index
      %c0_63 = arith.constant 0 : index
      %160 = vector.load %arg9[%c3_61, %159, %c0_62, %c0_63] : memref<4x1x8x8xf32, #tpu.memory_space<vmem>>, vector<1x1x8x8xf32>
      %161 = vector.shape_cast %160 : vector<1x1x8x8xf32> to vector<8x8xf32>
      %162 = arith.index_cast %158 : i32 to index
      %c24_64 = arith.constant 24 : index
      %163 = vector.load %arg10[%162, %c24_64] : memref<8x32xf32, #tpu.memory_space<vmem>>, vector<8x8xf32>
      %cst_65 = arith.constant dense<0.000000e+00> : vector<8x8xf32>
      %164 = tpu.matmul %114, %161, %cst_65 {dimension_numbers = #tpu.dot_dimension_numbers<[1], [0], [0], [1], [0, 0, 1, 1], [], []>} : vector<8x8xf32>, vector<8x8xf32>, vector<8x8xf32> -> vector<8x8xf32>
      %cst_66 = arith.constant dense<0xFF800000> : vector<8xf32>
      %165 = vector.multi_reduction <maximumf>, %164, %cst_66 [1] : vector<8x8xf32> to vector<8xf32>
      %166 = vector.shape_cast %165 : vector<8xf32> to vector<8x1xf32>
      %167 = arith.maximumf %arg12, %166 : vector<8x1xf32>
      %168 = arith.subf %arg12, %167 : vector<8x1xf32>
      %169 = math.exp %168 : vector<8x1xf32>
      %170 = vector.broadcast %167 : vector<8x1xf32> to vector<8x8xf32>
      %171 = arith.subf %164, %170 : vector<8x8xf32>
      %172 = math.exp %171 : vector<8x8xf32>
      %173 = arith.mulf %169, %arg13 : vector<8x1xf32>
      %cst_67 = arith.constant dense<0.000000e+00> : vector<8xf32>
      %174 = vector.multi_reduction <add>, %172, %cst_67 [1] : vector<8x8xf32> to vector<8xf32>
      %175 = vector.shape_cast %174 : vector<8xf32> to vector<8x1xf32>
      %176 = arith.addf %173, %175 : vector<8x1xf32>
      %177 = vector.broadcast %169 : vector<8x1xf32> to vector<8x8xf32>
      %178 = arith.mulf %177, %arg14 : vector<8x8xf32>
      %cst_68 = arith.constant dense<0.000000e+00> : vector<8x8xf32>
      %179 = tpu.matmul %172, %163, %cst_68 {dimension_numbers = #tpu.dot_dimension_numbers<[1], [0], [0], [1], [0, 0, 1, 1], [], []>} : vector<8x8xf32>, vector<8x8xf32>, vector<8x8xf32> -> vector<8x8xf32>
      %180 = arith.addf %178, %179 : vector<8x8xf32>
      scf.yield %167, %176, %180 : vector<8x1xf32>, vector<8x1xf32>, vector<8x8xf32>
    }
    %c3 = arith.constant 3 : index
    %121 = arith.index_cast %arg1 : i32 to index
    %c0_44 = arith.constant 0 : index
    %c0_45 = arith.constant 0 : index
    %122 = vector.load %arg9[%c3, %121, %c0_44, %c0_45] : memref<4x1x8x8xf32, #tpu.memory_space<vmem>>, vector<1x1x8x8xf32>
    %123 = vector.shape_cast %122 : vector<1x1x8x8xf32> to vector<8x8xf32>
    %124 = arith.index_cast %4 : i32 to index
    %c24_46 = arith.constant 24 : index
    %125 = vector.load %arg10[%124, %c24_46] : memref<8x32xf32, #tpu.memory_space<vmem>>, vector<8x8xf32>
    %cst_47 = arith.constant dense<0.000000e+00> : vector<8x8xf32>
    %126 = tpu.matmul %114, %123, %cst_47 {dimension_numbers = #tpu.dot_dimension_numbers<[1], [0], [0], [1], [0, 0, 1, 1], [], []>} : vector<8x8xf32>, vector<8x8xf32>, vector<8x8xf32> -> vector<8x8xf32>
    %cst_48 = arith.constant -1.000000e+04 : f32
    %127 = vector.broadcast %cst_48 : f32 to vector<8x8xf32>
    %128 = arith.select %7, %127, %126 : vector<8x8xi1>, vector<8x8xf32>
    %cst_49 = arith.constant dense<0xFF800000> : vector<8xf32>
    %129 = vector.multi_reduction <maximumf>, %128, %cst_49 [1] : vector<8x8xf32> to vector<8xf32>
    %130 = vector.shape_cast %129 : vector<8xf32> to vector<8x1xf32>
    %131 = arith.maximumf %120#0, %130 : vector<8x1xf32>
    %132 = arith.subf %120#0, %131 : vector<8x1xf32>
    %133 = math.exp %132 : vector<8x1xf32>
    %134 = vector.broadcast %131 : vector<8x1xf32> to vector<8x8xf32>
    %135 = arith.subf %128, %134 : vector<8x8xf32>
    %136 = math.exp %135 : vector<8x8xf32>
    %137 = arith.mulf %133, %120#1 : vector<8x1xf32>
    %cst_50 = arith.constant dense<0.000000e+00> : vector<8xf32>
    %138 = vector.multi_reduction <add>, %136, %cst_50 [1] : vector<8x8xf32> to vector<8xf32>
    %139 = vector.shape_cast %138 : vector<8xf32> to vector<8x1xf32>
    %140 = arith.addf %137, %139 : vector<8x1xf32>
    %141 = vector.broadcast %133 : vector<8x1xf32> to vector<8x8xf32>
    %142 = arith.mulf %141, %120#2 : vector<8x8xf32>
    %cst_51 = arith.constant dense<0.000000e+00> : vector<8x8xf32>
    %143 = tpu.matmul %136, %125, %cst_51 {dimension_numbers = #tpu.dot_dimension_numbers<[1], [0], [0], [1], [0, 0, 1, 1], [], []>} : vector<8x8xf32>, vector<8x8xf32>, vector<8x8xf32> -> vector<8x8xf32>
    %144 = arith.addf %142, %143 : vector<8x8xf32>
    %145 = tpu.reciprocal %140 {approx = true} : vector<8x1xf32> -> vector<8x1xf32>
    %146 = vector.broadcast %145 : vector<8x1xf32> to vector<8x8xf32>
    %147 = arith.mulf %144, %146 : vector<8x8xf32>
    %148 = tpu.concatenate %42, %77, %112, %147 in 1 : vector<8x8xf32>, vector<8x8xf32>, vector<8x8xf32>, vector<8x8xf32> -> vector<8x32xf32>
    %c0_52 = arith.constant 0 : index
    %c0_53 = arith.constant 0 : index
    %149 = vector.load %arg5[%c0_52, %c0_53] : memref<32x32xf32, #tpu.memory_space<vmem>>, vector<32x32xf32>
    %cst_54 = arith.constant dense<0.000000e+00> : vector<8x32xf32>
    %150 = tpu.matmul %148, %149, %cst_54 {dimension_numbers = #tpu.dot_dimension_numbers<[1], [0], [0], [1], [0, 0, 1, 1], [], []>} : vector<8x32xf32>, vector<32x32xf32>, vector<8x32xf32> -> vector<8x32xf32>
    %c0_55 = arith.constant 0 : index
    %c0_56 = arith.constant 0 : index
    %151 = vector.load %arg6[%c0_55, %c0_56] : memref<1x32xf32, #tpu.memory_space<vmem>>, vector<1x32xf32>
    %152 = vector.broadcast %151 : vector<1x32xf32> to vector<8x32xf32>
    %153 = arith.addf %150, %152 : vector<8x32xf32>
    %c0_57 = arith.constant 0 : index
    %c0_58 = arith.constant 0 : index
    %c0_59 = arith.constant 0 : index
    %154 = vector.load %arg7[%c0_57, %c0_58, %c0_59] : memref<1x8x32xf32, #tpu.memory_space<vmem>>, vector<1x8x32xf32>
    %155 = vector.shape_cast %154 : vector<1x8x32xf32> to vector<8x32xf32>
    %156 = vector.shape_cast %153 : vector<8x32xf32> to vector<1x8x32xf32>
    tpu.vector_store %arg7[%c0_57, %c0_58, %c0_59], %156 {strides = array<i32>} : memref<1x8x32xf32, #tpu.memory_space<vmem>>, vector<1x8x32xf32>,
    return
  }
  func.func @transform_0(%arg0: i32, %arg1: i32) -> (i32, i32, i32) {
    %c0_i32 = arith.constant 0 : i32
    %c0_i32_0 = arith.constant 0 : i32
    %c0_i32_1 = arith.constant 0 : i32
    return %arg0, %c0_i32, %c0_i32_0 : i32, i32, i32
  }
  func.func @transform_1(%arg0: i32, %arg1: i32) -> (i32, i32) {
    %c0_i32 = arith.constant 0 : i32
    %c0_i32_0 = arith.constant 0 : i32
    %c0_i32_1 = arith.constant 0 : i32
    return %c0_i32, %c0_i32_0 : i32, i32
  }
  func.func @transform_2(%arg0: i32, %arg1: i32) -> (i32, i32) {
    %c0_i32 = arith.constant 0 : i32
    %c0_i32_0 = arith.constant 0 : i32
    %c0_i32_1 = arith.constant 0 : i32
    return %c0_i32, %c0_i32_0 : i32, i32
  }
  func.func @transform_3(%arg0: i32, %arg1: i32) -> (i32, i32) {
    %c0_i32 = arith.constant 0 : i32
    %c0_i32_0 = arith.constant 0 : i32
    %c0_i32_1 = arith.constant 0 : i32
    return %c0_i32, %c0_i32_0 : i32, i32
  }
  func.func @transform_4(%arg0: i32, %arg1: i32) -> (i32, i32) {
    %c0_i32 = arith.constant 0 : i32
    %c0_i32_0 = arith.constant 0 : i32
    %c0_i32_1 = arith.constant 0 : i32
    return %c0_i32, %c0_i32_0 : i32, i32
  }
  func.func @transform_5(%arg0: i32, %arg1: i32) -> (i32, i32, i32) {
    %c0_i32 = arith.constant 0 : i32
    %c0_i32_0 = arith.constant 0 : i32
    return %arg0, %arg1, %c0_i32 : i32, i32, i32
  }
}

</mosaic_0001>

<bundles_post_ra>
// kernel: tpu_custom_call.1
= control target key start
LH: loop header
LB: loop body
LE: loop exit
PB: predicated region body
PF: predicated region fallthrough
CT: control target
= control target key end

     0   :  { %s3119_s0 = inlined_call_operand.hbm [shape: f32[2,8,32], index: 0, kind: input, shape index: {}]   ;;  %s3120_s1 = inlined_call_operand.hbm [shape: f32[32,96], index: 1, kind: input, shape index: {}]   ;;  %s3121_s2 = inlined_call_operand.vmem [shape: f32[1,96], index: 2, kind: input, shape index: {}]   ;;  %s3122_s3 = inlined_call_operand.hbm [shape: f32[32,32], index: 3, kind: input, shape index: {}]   ;;  %s3123_s4 = inlined_call_operand.vmem [shape: f32[1,32], index: 4, kind: input, shape index: {}]   ;;  %s3124_s5 = inlined_call_operand.hbm [shape: f32[2,8,32], index: 5, kind: output, shape index: {}]  }
   0x1   :  { %3128 = sst [smem:[#allocation15_spill]] %s3120_s1 }
   0x2   :  { %10 = vsyncpa [#allocation6], 0 }
   0x3   :  { %12 = vsyncpa [#allocation6 + $0x1], 0 }
   0x4   :  { %13 = vsyncpa [#allocation9], 0 }
   0x5   :  { %14 = vsyncpa [#allocation7], 0 }
   0x6   :  { %16 = vsyncpa [#allocation7 + $0x1], 0  ;;  %s2825_s18 = smov 0   ;;  %s2827_s19 = smov 0  }
   0x7   :  { %s2829_s20 = smov 0   ;;  %s2831_s21 = smov 0  }
   0x8   :  { %s2833_s22 = smov 0   ;;  %s2835_s23 = smov 0  }
   0x9 LB: > { %s2322_s24 = sadd.s32 4294967295, %s2777_s23   ;;  %s2323_s25 = sadd.s32 4294967294, %s2777_s23   ;;  %s2777_s23 = sphi %s2835_s23, %s22_s23   ;;  %s2773_s22 = sphi %s2833_s22, %s3146_s22   ;;  %s2769_s21 = sphi %s2831_s21, %s3145_s21   ;;  %s2765_s20 = sphi %s2829_s20, %s3144_s20   ;;  %s2761_s19 = sphi %s2827_s19, %s3143_s19   ;;  %s2757_s18 = sphi %s2825_s18, %s3142_s18  }
   0xa   : > { %p54_p0 = scmp.ne.s32.totalorder %s2761_s19, %s2757_s18  ;;  %p2859_p1 = scmp.eq.s32.totalorder %s2322_s24, 0 }
   0xb   : > { %p2863_p2 = scmp.eq.s32.totalorder %s2322_s24, 1  ;;  %p170_p3 = scmp.eq.s32.totalorder %s2323_s25, 1 }
   0xc   : > { %s3129_s26 = scalar_select %p2859_p1, 1, 0 }
   0xd   : > { %p2869_p4 = por %p2859_p1, %p54_p0  ;;  %p2324_p5 = scmp.ge.s32.totalorder %s2777_s23, 1 }
   0xe   : > { %p2874_p6 = por %p170_p3, %p54_p0  ;;  %p177_p7 = scmp.lt.s32.totalorder %s2777_s23, 3 }
   0xf   : > { %s3131_s28 = scalar_select %p2869_p4, 1, 0 }
  0x10   : > { %s3132_s29 = scalar_select %p2874_p6, 1, 0 }
  0x11   : > { %p2879_p8 = pnand %p2324_p5, %p177_p7  ;;  %s2779_s6 = smov [#allocation8]  }
  0x12   : > { %s189_s7 = sshll.u32 %s2779_s6, 4  ;;  %s2780_s9 = smov [#allocation10]   ;;  %s190_s7 = int_to_ptr.vmem [resolvable:$true] %s189_s7 }
  0x13   : > { %p2506_p9 = pneg %p2879_p8  ;;  %s205_s10 = sshll.u32 %s2780_s9, 4  ;;  %s206_s10 = int_to_ptr.vmem [resolvable:$true] %s205_s10 }
  0x14   : > { %s2624_s11 = scalar_lea.vmem %s190_s7, 512  ;;  %p2632_p5 = scmp.lt.s32.totalorder %s190_s7, %s190_s7 }
  0x15   : > { %p2888_p11 = pnand %p2506_p9, %p2859_p1  ;;  %p2625_p13 = scmp.ne.s32.totalorder %s190_s7, %s2624_s11 }
  0x16   : > { %p2633_p7 = scmp.lt.s32.totalorder %s2624_s11, %s2624_s11 }
  0x17   : > { %p2615_p12 = pneg %p2888_p11 }
  0x18   : > { %p2634_p10 = por %p2633_p7, %p2632_p5 }
  0x19   : > { %p2627_p0 = pnand %p2625_p13, %p2615_p12 }
  0x1b   : > { %p2628_p3 = pneg %p2627_p0 }
  0x1d   : > { %p2635_p9 = pnand %p2634_p10, %p2628_p3 }
  0x1f   : > { %2638 = shalt.err (!%p2635_p9)
}
  0x20   : > { %s2781_s12 = smov 128   ;;  %s2782_s13 = smov 8  }
  0x21   : > { %s3135_s1 = sld [smem:[#allocation15_spill]]  ;;  %s2650_s16 = scalar_lea.vmem %s206_s10, 512 }
  0x22   : > { %p2651_p6 = scmp.ne.s32.totalorder %s206_s10, %s2650_s16  ;;  %p2658_p1 = scmp.lt.s32.totalorder %s206_s10, %s206_s10 }
  0x23   : > { %p2659_p4 = scmp.lt.s32.totalorder %s2650_s16, %s2650_s16 }
  0x24   : > { %p2653_p13 = pnand %p2651_p6, %p2615_p12 }
  0x25   : > { %p2660_p5 = por %p2659_p4, %p2658_p1 }
  0x26   : > { %p2654_p0 = pneg %p2653_p13 }
  0x27   : > { %2509 = dma.hbm_to_vmem [thread:$0]  (!%p2888_p11), %s3135_s1, 512, %s190_s7, [#allocation9], %s2781_s12, %s2781_s12, %s2782_s13  }
  0x28   : > { %p2661_p10 = pnand %p2660_p5, %p2654_p0 }
  0x2a   : > { %2664 = shalt.err (!%p2661_p10)
}
  0x2b   : > { %2512 = dma.hbm_to_vmem [thread:$0]  (!%p2888_p11), %s3122_s3, 512, %s206_s10, [#allocation9], %s2781_s12, %s2781_s12, %s2782_s13  }
  0x2c   : > { %s34_s25 = sadd.s32 1, %s2773_s22  ;;  %s41_s6 = sadd.s32 1, %s2765_s20 }
  0x2d   : > { %p36_p1 = scmp.ge.s32.totalorder %s34_s25, 2  ;;  %p48_p4 = scmp.ne.s32.totalorder %s2765_s20, %s2761_s19 }
  0x2e   : > { %p49_p6 = scmp.eq.s32.totalorder %s2777_s23, 0  ;;  %p2523_p12 = scmp.lt.s32.totalorder %s2777_s23, 2 }
  0x2f   : > { %s3148_s25 = smov (%p36_p1, %s34_s25), 0  ;;  %p2920_p7 = por %p2863_p2, %p48_p4 }
  0x30   : > { %p50_p3 = por %p49_p6, %p48_p4  ;;  %s38_s8 = ssub.s32 %s2773_s22, %s3148_s25 }
  0x31   : > { %s222_s9 = sand.u32 1, %s2765_s20   ;;  %p39_p9 = scmp.eq.s32.totalorder %s38_s8, 0 }
  0x32   : > { %s2328_s10 = sshll.u32 %s222_s9, 3  ;;  %s2329_s11 = sshll.u32 %s2773_s22, 7 }
  0x33   : > { %s2929_s12 = scalar_select %p39_p9, %s2765_s20, %s41_s6  }
  0x34   : > { %s231_s15 = scalar_lea.hbm %s3119_s0, %s2329_s11  ;;  %s226_s16 = scalar_lea.vmem [#allocation5], %s2328_s10 }
  0x35   : > { %s233_s17 = sshll.u32 %s226_s16, 4  ;;  %p2936_p11 = pnand %p2523_p12, %p50_p3  ;;  %s234_s17 = int_to_ptr.vmem [resolvable:$true] %s233_s17 }
  0x36   : > { %s223_s24 = scalar_lea.sflag [#allocation6], %s222_s9  ;;  %s2678_s8 = scalar_lea.vmem %s234_s17, 128 }
  0x37   : > { %p2667_p2 = pneg %p2936_p11  ;;  %p2679_p13 = scmp.ne.s32.totalorder %s234_s17, %s2678_s8 }
  0x38   : > { %s2783_s6 = smov [#allocation5]  }
  0x39   : > { %p2681_p0 = pnand %p2679_p13, %p2667_p2  ;;  %s2683_s1 = sshll.u32 %s2783_s6, 4  ;;  %s2684_s1 = int_to_ptr.vmem [resolvable:$false] %s2683_s1 }
  0x3a   : > { %s2685_s11 = scalar_lea.vmem %s2684_s1, 256  ;;  %p2686_p10 = scmp.lt.s32.totalorder %s234_s17, %s2684_s1 }
  0x3b   : > { %p2682_p5 = pneg %p2681_p0  ;;  %p2687_p1 = scmp.lt.s32.totalorder %s2685_s11, %s2678_s8 }
  0x3d   : > { %p2688_p4 = por %p2687_p1, %p2686_p10 }
  0x3f   : > { %p2689_p6 = pnand %p2688_p4, %p2682_p5 }
  0x41   : > { %2692 = shalt.err (!%p2689_p6)
}
  0x42   : > { %2516 = dma.hbm_to_vmem [thread:$0]  (!%p2936_p11), %s231_s15, 128, %s234_s17, %s223_s24  }
  0x43   : > { %242 = sbr.rel (%p2879_p8) target bundleno = 1767 (0x6e7), region = 40  ;;  %s2947_s9 = sand.u32 (!%p2879_p8), 1, %s2761_s19  }
  0x44   : > { %s2331_s10 = sshll.u32 (!%p2879_p8), %s2947_s9, 3  ;;  %s245_s13 = scalar_lea.sflag (!%p2879_p8), [#allocation6], %s2947_s9 }
  0x45   : > { %s248_s1 = scalar_lea.vmem (!%p2879_p8), [#allocation5], %s2331_s10  ;;  %p3138_p12 = scmp.ne.s32.totalorder (!%p2879_p8), %s3131_s28, 0 }
  0x48   : > { %2744 = dma.done.wait (%p3138_p12), %s245_s13, 128  }
  0x49   : > { %2746 = vsyncadd (%p3138_p12), %s245_s13, 4294967168  ;;  %p3139_p3 = scmp.ne.s32.totalorder %s3129_s26, 0 }
  0x4b   : > { %2748 = dma.done.wait (%p3139_p3), [#allocation9], 1024  }
  0x4c   : > { %2750 = vsyncadd (%p3139_p3), [#allocation9], 4294966272  ;;  %v2784_v0 = vmov 0.0   ;;  %vm2785_vm0 = vmmov 0   ;;  %v292_v1 = vld [vmem:[#allocation8 + $0x18] sm:$0xff]  ;;  %v290_v2 = vld [vmem:[#allocation8 + $0x8] sm:$0xff]  ;;  %v591_v28 = vlaneseq }
  0x4d   : > { %2421 = vmatprep.subr.mxu1 %v2784_v0  ;;  %2410 = vmatprep.subr.mxu0 %v2784_v0  ;;  %s2786_s28 = smov 96   ;;  %v291_v3 = vld [vmem:[#allocation8 + $0x10] sm:$0xff]  ;;  %v289_v4 = vld [vmem:[#allocation8] sm:$0xff]  ;;  %vm299_vm1 = vcmask 261120   ;;  %s2787_s14 = smov 64   ;;  %vm582_vm2 = vcmask 64512  }
  0x4e   : > { %2429 = vmatprep.mubr.msk.f32.mxu1 %vm2785_vm0, %v2784_v0  ;;  %2418 = vmatprep.mubr.msk.f32.mxu0 %vm2785_vm0, %v2784_v0  ;;  %v2335_v5 = vld [vmem:[%s3121_s2] ss:$0 sm:$0xff]  ;;  %v288_v6 = vld [vmem:[%s248_s1] sm:$0xff]  ;;  %v2999_v29 = vshrl.u32 %v591_v28, 7  ;;  %v3001_v30 = vand.u32 127, %v591_v28  ;;  %s2788_s15 = smov 120  }
  0x4f   : > { %383 = vrot.lane.b32.xlu0 %v292_v1, %s2786_s28  ;;  %379 = vrot.lane.b32.xlu1 %v290_v2, %s2786_s28  ;;  %s2789_s16 = smov 112   ;;  %s2790_s17 = smov 104   ;;  %vm2029_vm4 = vcmask 130048   ;;  %vm2031_vm5 = vcmask 195584  }
  0x50   : > { %2411 = vmatpush3.msra.mxu0 %v292_v1  ;;  %vm595_vm3 = vcmp.lt.s32.totalorder %v2999_v29, %v3001_v30  ;;  %s2791_s27 = smov 8   ;;  %s2792_s24 = smov 16  }
  0x51   : > { %2412 = vmatprep.subr.mxu0 %v2784_v0  ;;  %s2793_s8 = smov 24   ;;  %s2371_s13 = sshll.u32 %s2769_s21, 7 }
  0x52   : > { %2413 = vmatpush3.msra.mxu0 %v291_v3  ;;  %s282_s1 = scalar_lea.vmem [#allocation11], %s2331_s10  ;;  %s2794_s21 = smov [#allocation11]  }
  0x53   : > { %381 = vrot.lane.b32.xlu0 %v291_v3, %s2786_s28  ;;  %377 = vrot.lane.b32.xlu1 %v289_v4, %s2786_s28  ;;  %s2697_s10 = sshll.u32 %s2794_s21, 4  ;;  %s2698_s10 = int_to_ptr.vmem [resolvable:$false] %s2697_s10 }
  0x54   : > { %2414 = vmatprep.subr.mxu0 %v2784_v0 }
  0x55   : > { %2415 = vmatpush3.msra.mxu0 %v290_v2 }
  0x56   : > { %2416 = vmatprep.subr.mxu0 %v2784_v0 }
  0x57   : > { %389 = vrot.lane.b32.xlu0 %v2335_v5, %s2786_s28  ;;  %2417 = vmatpush3.msra.mxu0 %v289_v4  ;;  %s2134_s28 = sshll.u32 %s282_s1, 4  ;;  %s2135_s28 = int_to_ptr.vmem [resolvable:$true] %s2134_s28 }
  0x58   : > { %2419 = vmatmul.mubr.msk.f32.vlgmr.msra.gmra.mxu0 %vm299_vm1, %v288_v6  ;;  %2432 = vmatprep.subr.mxu0 %v2784_v0  ;;  %p2700_p2 = scmp.lt.s32.totalorder %s2135_s28, %s2698_s10 }
  0x59   : > { %2440 = vmatprep.mubr.msk.f32.mxu0 %vm2785_vm0, %v2784_v0 }
  0x5b   : > { %468 = vrot.lane.b32.xlu0 %v292_v1, %s2787_s14 }
  0x5f   : > { %466 = vrot.lane.b32.xlu0 %v291_v3, %s2787_s14 }
  0x63   : > { %464 = vrot.lane.b32.xlu0 %v290_v2, %s2787_s14 }
  0x67   : > { %462 = vrot.lane.b32.xlu0 %v289_v4, %s2787_s14 }
  0xc1   : > { %v384_v7 = vpop.permute.xlu0 %383  ;;  %v380_v8 = vpop.permute.xlu1 %379 }
  0xc2   : > { %2422 = vmatpush3.msra.mxu1 %v384_v7 }
  0xc3   : > { %2423 = vmatprep.subr.mxu1 %v2784_v0 }
  0xc5   : > { %v382_v9 = vpop.permute.xlu0 %381  ;;  %v378_v10 = vpop.permute.xlu1 %377 }
  0xc6   : > { %2424 = vmatpush3.msra.mxu1 %v382_v9 }
  0xc7   : > { %2425 = vmatprep.subr.mxu1 %v2784_v0 }
  0xc8   : > { %2426 = vmatpush3.msra.mxu1 %v380_v8 }
  0xc9   : > { %2427 = vmatprep.subr.mxu1 %v2784_v0  ;;  %v390_v15 = vpop.permute.xlu0 %389 }
  0xca   : > { %2428 = vmatpush3.msra.mxu1 %v378_v10 }
  0xcb   : > { %2430 = vmatmul.mubr.msk.f32.vlgmr.msra.gmra.mxu1 %vm299_vm1, %v288_v6  ;;  %2443 = vmatprep.subr.mxu1 %v2784_v0 }
  0xcc   : > { %2445 = vmatprep.mubr.msk.f32.mxu1 %vm2785_vm0, %v2784_v0 }
  0xcd   : > { %v469_v19 = vpop.permute.xlu0 %468 }
  0xce   : > { %2433 = vmatpush3.msra.mxu0 %v469_v19 }
  0xcf   : > { %2434 = vmatprep.subr.mxu0 %v2784_v0 }
  0xd1   : > { %v467_v21 = vpop.permute.xlu0 %466 }
  0xd2   : > { %2435 = vmatpush3.msra.mxu0 %v467_v21 }
  0xd3   : > { %2436 = vmatprep.subr.mxu0 %v2784_v0 }
  0xd5   : > { %v465_v22 = vpop.permute.xlu0 %464 }
  0xd6   : > { %2437 = vmatpush3.msra.mxu0 %v465_v22 }
  0xd7   : > { %2438 = vmatprep.subr.mxu0 %v2784_v0 }
  0xd9   : > { %v463_v25 = vpop.permute.xlu0 %462 }
  0xda   : > { %2439 = vmatpush3.msra.mxu0 %v463_v25 }
  0xdb   : > { %2441 = vmatmul.mubr.msk.f32.vlgmr.msra.gmra.mxu0 %vm299_vm1, %v288_v6  ;;  %2463 = vmatprep.subr.mxu0 %v2784_v0 }
  0xdc   : > { %2465 = vmatprep.mubr.msk.f32.mxu0 %vm2785_vm0, %v2784_v0 }
 0x118   : > { %v369_v11 = vpop.f32.mrf.mxu0 }
 0x119   : > { %v370_v12 = vadd.f32 %v2335_v5, %v369_v11 }
 0x11a   : > { %v2420_v13 = vpop.f32.mrf.mxu0 }
 0x11b   : > { %v547_v14 = vmul.f32 0.35355338, %v370_v12 }
 0x11d   : > { %548 = vst.msk [vmem:[#allocation2] sm:$0xff] %vm299_vm1, %v547_v14 }
 0x124   : > { %v597_v23 = vld [vmem:[#allocation2] sm:$0xff] }
 0x18b   : > { %v458_v16 = vpop.f32.mrf.mxu1 }
 0x18c   : > { %v459_v17 = vadd.f32 %v458_v16, %v390_v15 }
 0x18d   : > { %v2431_v18 = vpop.f32.mrf.mxu1 }
 0x18e   : > { %550 = vxpose.xlu1.b32.start.end [1/1] (short) (narrow) %v459_v17, 32 }
 0x19b   : > { %v543_v36 = vpop.f32.mrf.mxu0 }
 0x19d   : > { %v2442_v40 = vpop.f32.mrf.mxu0 }
 0x1b8   : > { %474 = vrot.lane.b32.xlu1 %v2335_v5, %s2787_s14  ;;  %s3076_s14 = scalar_lea.hbm %s3124_s5, %s2371_s13 }
 0x20a   : > { %v566_v20 = vpop.trf.xlu1 }
 0x20b   : > { %583 = vst.msk [vmem:[#allocation3] sm:$0xff] %vm582_vm2, %v566_v20 }
 0x20e   : > { %v567_v26 = vpop.trf.xlu1 }
 0x20f   : > { %585 = vst.msk [vmem:[#allocation3 + $0x8] sm:$0xff] %vm582_vm2, %v567_v26 }
 0x212   : > { %v777_v24 = vld [vmem:[#allocation3] sm:$0xff]  ;;  %v568_v27 = vpop.trf.xlu1 }
 0x213   : > { %2444 = vmatpush3.msra.mxu1 %v777_v24  ;;  %587 = vst.msk [vmem:[#allocation3 + $0x10] sm:$0xff] %vm582_vm2, %v568_v27 }
 0x214   : > { %2446 = vmatmul.mubr.msk.f32.vlgmr.msra.gmra.mxu1 %vm582_vm2, %v597_v23  ;;  %2448 = vmatprep.subr.mxu1 %v2784_v0 }
 0x215   : > { %2450 = vmatprep.mubr.msk.f32.mxu1 %vm2785_vm0, %v2784_v0 }
 0x216   : > { %v569_v35 = vpop.trf.xlu1  ;;  %v2349_v50 = vld [vmem:[#allocation3 + $0x8] sm:$0xff] }
 0x217   : > { %589 = vst.msk [vmem:[#allocation3 + $0x18] sm:$0xff] %vm582_vm2, %v569_v35 }
 0x21a   : > { %v2357_v37 = vld [vmem:[#allocation3 + $0x10] sm:$0xff] }
 0x21b   : > { %2464 = vmatpush3.msra.mxu0 %v2357_v37 }
 0x21c   : > { %2473 = vmatprep.subr.mxu0 %v2784_v0 }
 0x21e   : > { %v2365_v46 = vld [vmem:[#allocation3 + $0x18] sm:$0xff] }
 0x22a   : > { %v475_v38 = vpop.permute.xlu1 %474 }
 0x22b   : > { %v544_v39 = vadd.f32 %v543_v36, %v475_v38 }
 0x22d   : > { %549 = vst.msk [vmem:[#allocation4] sm:$0xff] %vm299_vm1, %v544_v39 }
 0x234   : > { %v779_v41 = vld [vmem:[#allocation4] sm:$0xff] }
 0x235   : > { %2449 = vmatpush3.msra.mxu1 %v779_v41 }
 0x236   : > { %2453 = vmatprep.subr.mxu1 %v2784_v0 }
 0x2d4   : > { %v850_v31 = vpop.f32.mrf.mxu1 }
 0x2d5   : > { %v854_v32 = vsel %vm595_vm3, -10000.0, %v850_v31 }
 0x2d6   : > { %v855_v33 = vsel %vm582_vm2, %v854_v32, -inf  ;;  %v2447_v34 = vpop.f32.mrf.mxu1 }
 0x2d7   : > { %856 = vmax.xlane.f32.xlu0 %v855_v33 }
 0x2ed   : > { %1133 = vrot.lane.b32.xlu0 %v597_v23, %s2788_s15 }
 0x2f1   : > { %1490 = vrot.lane.b32.xlu0 %v597_v23, %s2789_s16 }
 0x2f5   : > { %1846 = vrot.lane.b32.xlu0 %v597_v23, %s2790_s17 }
 0x360   : > { %v857_v42 = vpop.xlane.xlu0 %856 }
 0x361   : > { %v862_v43 = vsub.f32 %v854_v32, %v857_v42  ;;  %v859_v51 = vsub.f32 -inf, %v857_v42 }
 0x363   : > { %v863_v44 = vmul.f32 1.442695, %v862_v43  ;;  %v860_v52 = vmul.f32 1.442695, %v859_v51 }
 0x364   : > { %v1134_v45 = vpop.permute.xlu0 %1133 }
 0x365   : > { %2589 = vpow2.f32 %v863_v44 }
 0x366   : > { %2591 = vpow2.f32 %v860_v52  ;;  %v2033_v52 = vld [vmem:[#allocation10] sm:$0xff] }
 0x368   : > { %v1491_v47 = vpop.permute.xlu0 %1490 }
 0x369   : > { %2466 = vmatmul.mubr.msk.f32.vlgmr.msra.gmra.mxu0 %vm582_vm2, %v1491_v47  ;;  %v2036_v47 = vld [vmem:[#allocation10 + $0x18] sm:$0xff] }
 0x36a   : > { %2474 = vmatpush3.msra.mxu0 %v2365_v46  ;;  %2475 = vmatprep.mubr.msk.f32.mxu0 %vm2785_vm0, %v2784_v0 }
 0x36b   : > { %2483 = vmatprep.subr.mxu0 %v2784_v0 }
 0x36c   : > { %v1847_v48 = vpop.permute.xlu0 %1846 }
 0x36d   : > { %2476 = vmatmul.mubr.msk.f32.vlgmr.msra.gmra.mxu0 %vm582_vm2, %v1847_v48 }
 0x36e   : > { %2491 = vmatprep.mubr.msk.f32.mxu0 %vm2785_vm0, %v2784_v0  ;;  %2484 = vmatpush3.msra.mxu0 %v2036_v47 }
 0x36f   : > { %2485 = vmatprep.subr.mxu0 %v2784_v0 }
 0x372   : > { %v3023_v49 = vpop.eup %2589 }
 0x373   : > { %2451 = vmatmul.mubr.msk.f32.vlgmr.msra.gmra.mxu1 %vm582_vm2, %v3023_v49  ;;  %v2592_v61 = vpop.eup %2591  ;;  %v866_v25 = vsel %vm582_vm2, %v3023_v49, 0.0  ;;  %v2035_v49 = vld [vmem:[#allocation10 + $0x10] sm:$0xff] }
 0x374   : > { %2454 = vmatpush3.msra.mxu1 %v2349_v50  ;;  %2455 = vmatprep.mubr.msk.f32.mxu1 %vm2785_vm0, %v2784_v0  ;;  %v865_v62 = vmul.f32 0.0, %v2592_v61  ;;  %v2034_v50 = vld [vmem:[#allocation10 + $0x8] sm:$0xff] }
 0x375   : > { %2458 = vmatprep.subr.mxu1 %v2784_v0  ;;  %2486 = vmatpush3.msra.mxu0 %v2035_v49 }
 0x376   : > { %2487 = vmatprep.subr.mxu0 %v2784_v0 }
 0x377   : > { %2456 = vmatmul.mubr.msk.f32.vlgmr.msra.gmra.mxu1 %vm582_vm2, %v1134_v45  ;;  %2488 = vmatpush3.msra.mxu0 %v2034_v50 }
 0x378   : > { %2460 = vmatprep.mubr.msk.f32.mxu1 %vm2785_vm0, %v2784_v0  ;;  %2489 = vmatprep.subr.mxu0 %v2784_v0 }
 0x379   : > { %2490 = vmatpush3.msra.mxu0 %v2033_v52 }
 0x429   : > { %v1560_v53 = vpop.f32.mrf.mxu0 }
 0x42a   : > { %v1564_v54 = vsel %vm595_vm3, -10000.0, %v1560_v53 }
 0x42b   : > { %v2467_v55 = vpop.f32.mrf.mxu0  ;;  %v1565_v56 = vsel %vm582_vm2, %v1564_v54, -inf }
 0x42c   : > { %1566 = vmax.xlane.f32.xlu1 %v1565_v56 }
 0x42d   : > { %v1916_v57 = vpop.f32.mrf.mxu0 }
 0x42e   : > { %v1920_v58 = vsel %vm595_vm3, -10000.0, %v1916_v57 }
 0x42f   : > { %v2477_v59 = vpop.f32.mrf.mxu0  ;;  %v1921_v60 = vsel %vm582_vm2, %v1920_v58, -inf }
 0x430   : > { %1922 = vmax.xlane.f32.xlu0 %v1921_v60 }
 0x433   : > { %v940_v63 = vpop.f32.mrf.mxu1 }
 0x434   : > { %v944_v1 = vadd.f32 %v940_v63, %v865_v62 }
 0x435   : > { %v2452_v2 = vpop.f32.mrf.mxu1 }
 0x437   : > { %v1203_v3 = vpop.f32.mrf.mxu1 }
 0x438   : > { %v1207_v4 = vsel %vm595_vm3, -10000.0, %v1203_v3 }
 0x439   : > { %v2457_v5 = vpop.f32.mrf.mxu1  ;;  %v1208_v6 = vsel %vm582_vm2, %v1207_v4, -inf }
 0x43a   : > { %1209 = vmax.xlane.f32.xlu0 %v1208_v6 }
 0x43d   : > { %1581 = vrot.lane.b32.xlu1 %v779_v41, %s2789_s16  ;;  %s2693_s16 = scalar_lea.vmem %s2135_s28, 128 }
 0x43e   : > { %p2694_p8 = scmp.ne.s32.totalorder %s2135_s28, %s2693_s16 }
 0x440   : > { %p2695_p9 = pnand %p2694_p8, %p2920_p7 }
 0x441   : > { %1937 = vrot.lane.b32.xlu1 %v779_v41, %s2790_s17  ;;  %s2699_s17 = scalar_lea.vmem %s2698_s10, 256 }
 0x442   : > { %p2696_p11 = pneg %p2695_p9  ;;  %p2701_p13 = scmp.lt.s32.totalorder %s2699_s17, %s2693_s16 }
 0x444   : > { %p2702_p0 = por %p2701_p13, %p2700_p2 }
 0x446   : > { %p2703_p5 = pnand %p2702_p0, %p2696_p11 }
 0x450   : > { %1225 = vrot.lane.b32.xlu0 %v779_v41, %s2788_s15  ;;  %s2120_s15 = scalar_lea.sflag [#allocation7], %s2947_s9 }
 0x4b5   : > { %v1567_v7 = vpop.xlane.xlu1 %1566 }
 0x4b6   : > { %v1572_v8 = vsub.f32 %v1564_v54, %v1567_v7  ;;  %v1569_v31 = vsub.f32 -inf, %v1567_v7 }
 0x4b8   : > { %v1573_v9 = vmul.f32 1.442695, %v1572_v8  ;;  %v1570_v33 = vmul.f32 1.442695, %v1569_v31 }
 0x4b9   : > { %v1923_v10 = vpop.xlane.xlu0 %1922  ;;  %v1582_v19 = vpop.permute.xlu1 %1581 }
 0x4ba   : > { %2593 = vpow2.f32 %v1573_v9  ;;  %v1928_v11 = vsub.f32 %v1920_v58, %v1923_v10  ;;  %v1925_v34 = vsub.f32 -inf, %v1923_v10  ;;  %v2368_v9 = vld [vmem:[%s3123_s4] ss:$0 sm:$0xff] }
 0x4bc   : > { %v1929_v16 = vmul.f32 1.442695, %v1928_v11  ;;  %v1926_v36 = vmul.f32 1.442695, %v1925_v34 }
 0x4bd   : > { %v1938_v23 = vpop.permute.xlu1 %1937 }
 0x4c3   : > { %v1210_v12 = vpop.xlane.xlu0 %1209 }
 0x4c4   : > { %v1215_v13 = vsub.f32 %v1207_v4, %v1210_v12  ;;  %v1212_v30 = vsub.f32 -inf, %v1210_v12 }
 0x4c6   : > { %v1216_v14 = vmul.f32 1.442695, %v1215_v13  ;;  %v1213_v32 = vmul.f32 1.442695, %v1212_v30 }
 0x4c7   : > { %v2594_v15 = vpop.eup %2593  ;;  %v1226_v17 = vpop.permute.xlu0 %1225 }
 0x4c8   : > { %2459 = vmatpush3.msra.mxu1 %v1226_v17  ;;  %v1576_v18 = vsel %vm582_vm2, %v2594_v15, 0.0  ;;  %2595 = vpow2.f32 %v1216_v14 }
 0x4c9   : > { %1577 = vadd.xlane.f32.xlu1 %v1576_v18  ;;  %2468 = vmatprep.subr.mxu1 %v2784_v0  ;;  %2597 = vpow2.f32 %v1929_v16 }
 0x4d5   : > { %v2596_v20 = vpop.eup %2595 }
 0x4d6   : > { %2461 = vmatmul.mubr.msk.f32.vlgmr.msra.gmra.mxu1 %vm582_vm2, %v2596_v20  ;;  %v1219_v21 = vsel %vm582_vm2, %v2596_v20, 0.0  ;;  %v2598_v22 = vpop.eup %2597 }
 0x4d7   : > { %2469 = vmatpush3.msra.mxu1 %v1582_v19  ;;  %1220 = vadd.xlane.f32.xlu0 %v1219_v21  ;;  %v1932_v24 = vsel %vm582_vm2, %v2598_v22, 0.0 }
 0x4d8   : > { %2470 = vmatprep.mubr.msk.f32.mxu1 %vm2785_vm0, %v2784_v0  ;;  %2478 = vmatprep.subr.mxu1 %v2784_v0 }
 0x4da   : > { %2471 = vmatmul.mubr.msk.f32.vlgmr.msra.gmra.mxu1 %vm582_vm2, %v2594_v15 }
 0x4db   : > { %2479 = vmatpush3.msra.mxu1 %v1938_v23  ;;  %1933 = vadd.xlane.f32.xlu0 %v1932_v24 }
 0x4dc   : > { %2480 = vmatprep.mubr.msk.f32.mxu1 %vm2785_vm0, %v2784_v0 }
 0x4de   : > { %2481 = vmatmul.mubr.msk.f32.vlgmr.msra.gmra.mxu1 %vm582_vm2, %v2598_v22 }
 0x4df   : > { %867 = vadd.xlane.f32.xlu0 %v866_v25 }
 0x552   : > { %v1578_v42 = vpop.xlane.xlu1 %1577 }
 0x560   : > { %v1221_v26 = vpop.xlane.xlu0 %1220 }
 0x564   : > { %v1934_v27 = vpop.xlane.xlu0 %1933 }
 0x568   : > { %v868_v28 = vpop.xlane.xlu0 %867 }
 0x569   : > { %v869_v29 = vadd.f32 %v868_v28, %v865_v62 }
 0x56b   : > { %2599 = vrcp.f32 %v869_v29 }
 0x56c   : > { %2601 = vpow2.f32 %v1213_v32 }
 0x56d   : > { %2603 = vpow2.f32 %v1570_v33 }
 0x56e   : > { %2605 = vpow2.f32 %v1926_v36 }
 0x578   : > { %v2600_v35 = vpop.eup %2599 }
 0x579   : > { %v946_v37 = vmul.f32 %v2600_v35, %v944_v1  ;;  %v2602_v38 = vpop.eup %2601 }
 0x57a   : > { %v1218_v39 = vmul.f32 0.0, %v2602_v38  ;;  %v2604_v40 = vpop.eup %2603 }
 0x57b   : > { %v1575_v43 = vmul.f32 0.0, %v2604_v40  ;;  %v2606_v44 = vpop.eup %2605 }
 0x57c   : > { %v1222_v41 = vadd.f32 %v1221_v26, %v1218_v39  ;;  %v1931_v46 = vmul.f32 0.0, %v2606_v44 }
 0x57d   : > { %v1579_v45 = vadd.f32 %v1578_v42, %v1575_v43 }
 0x57e   : > { %2607 = vrcp.f32 %v1222_v41  ;;  %v1935_v48 = vadd.f32 %v1934_v27, %v1931_v46 }
 0x57f   : > { %2609 = vrcp.f32 %v1579_v45 }
 0x580   : > { %2611 = vrcp.f32 %v1935_v48 }
 0x58b   : > { %v2608_v54 = vpop.eup %2607 }
 0x58c   : > { %v2610_v59 = vpop.eup %2609 }
 0x58d   : > { %v2612_v1 = vpop.eup %2611 }
 0x596   : > { %v1297_v51 = vpop.f32.mrf.mxu1 }
 0x597   : > { %v1301_v53 = vadd.f32 %v1297_v51, %v1218_v39 }
 0x598   : > { %v2462_v55 = vpop.f32.mrf.mxu1 }
 0x599   : > { %v1303_v56 = vmul.f32 %v2608_v54, %v1301_v53 }
 0x59a   : > { %v1653_v57 = vpop.f32.mrf.mxu1 }
 0x59b   : > { %v1657_v58 = vadd.f32 %v1653_v57, %v1575_v43  ;;  %2017 = vrot.lane.b32.xlu1 %v1303_v56, %s2791_s27 }
 0x59c   : > { %v2472_v60 = vpop.f32.mrf.mxu1 }
 0x59d   : > { %v1659_v61 = vmul.f32 %v2610_v59, %v1657_v58 }
 0x59e   : > { %v2009_v62 = vpop.f32.mrf.mxu1 }
 0x59f   : > { %v2013_v63 = vadd.f32 %v2009_v62, %v1931_v46  ;;  %2021 = vrot.lane.b32.xlu0 %v1659_v61, %s2792_s24 }
 0x5a0   : > { %v2482_v0 = vpop.f32.mrf.mxu1 }
 0x5a1   : > { %v2015_v2 = vmul.f32 %v2612_v1, %v2013_v63 }
 0x5a3   : > { %2025 = vrot.lane.b32.xlu1 %v2015_v2, %s2793_s8 }
 0x60d   : > { %v2018_v3 = vpop.permute.xlu1 %2017 }
 0x60e   : > { %v2028_v5 = vsel %vm582_vm2, %v946_v37, %v2018_v3 }
 0x611   : > { %v2022_v4 = vpop.permute.xlu0 %2021 }
 0x612   : > { %v2030_v6 = vsel %vm2029_vm4, %v2028_v5, %v2022_v4 }
 0x615   : > { %v2026_v7 = vpop.permute.xlu1 %2025 }
 0x616   : > { %v2032_v8 = vsel %vm2031_vm5, %v2030_v6, %v2026_v7 }
 0x617   : > { %2492 = vmatmul.mubr.msk.f32.vlgmr.msra.gmra.mxu0 %vm299_vm1, %v2032_v8 }
 0x6d7   : > { %v2114_v10 = vpop.f32.mrf.mxu0 }
 0x6d8   : > { %v2115_v11 = vadd.f32 %v2368_v9, %v2114_v10 }
 0x6d9   : > { %v2493_v12 = vpop.f32.mrf.mxu0 }
 0x6da   : > { %2118 = vst.msk [vmem:[%s282_s1] sm:$0xff] %vm299_vm1, %v2115_v11 }
 0x6db   : > { %2706 = shalt.err (!%p2703_p5)
}
 0x6dc   : > { %s2707_s27 = scalar_lea.hbm %s3076_s14, 128  ;;  %s2711_s8 = scalar_lea.hbm %s3124_s5, 256 }
 0x6dd   : > { %p2708_p10 = scmp.ne.s32.totalorder %s3076_s14, %s2707_s27  ;;  %p2712_p6 = scmp.lt.s32.totalorder %s3076_s14, %s3124_s5 }
 0x6de   : > { %p2713_p12 = scmp.lt.s32.totalorder %s2711_s8, %s2707_s27 }
 0x6df   : > { %p2709_p1 = pnand %p2708_p10, %p2920_p7 }
 0x6e0   : > { %p2714_p3 = por %p2713_p12, %p2712_p6 }
 0x6e1   : > { %p2710_p4 = pneg %p2709_p1 }
 0x6e3   : > { %p2715_p8 = pnand %p2714_p3, %p2710_p4 }
 0x6e5   : > { %2718 = shalt.err (!%p2715_p8)
}
 0x6e6   : > { %2504 = dma.vmem_to_hbm [thread:$0]  (%p2920_p7), %s2135_s28, 128, %s3076_s14, %s2120_s15  }
 0x6e7 PF: > { %s2146_s13 = sand.u32 1, %s2757_s18   ;;  %p3140_p9 = scmp.ne.s32.totalorder %s3132_s29, 0 }
 0x6e8   : > { %p3141_p11 = scmp.ge.s32.totalorder %s2777_s23, 2  ;;  %s2147_s1 = scalar_lea.sflag [#allocation7], %s2146_s13 }
 0x6ea   : > { %p2518_p2 = pnand %p3141_p11, %p3140_p9 }
 0x6ec   : > { %p2519_p13 = pneg %p2518_p2 }
 0x6ee   : > { %2752 = dma.done.wait (%p2519_p13), %s2147_s1, 128  }
 0x6ef   : > { %2754 = vsyncadd (%p2519_p13), %s2147_s1, 4294967168  ;;  %s22_s23 = sadd.s32 1, %s2777_s23   ;;  %s3142_s18 = smov %s2761_s19 }
 0x6f0   : > { %p19_p0 = scmp.ge.s32.totalorder %s22_s23, 4   ;;  %s3143_s19 = smov %s2765_s20 }
 0x6f1   : > { %s3144_s20 = smov %s2929_s12  ;;  %s3145_s21 = smov %s2773_s22 }
 0x6f2   : > { %s3146_s22 = smov %s3148_s25  ;;  %21 = sbr.rel (!%p19_p0) target bundleno = 9 (0x9), region = 186 }
 0x6f7   :  { %2152 = vsyncpa [#allocation6], 1 }
 0x6f8   :  { %2154 = vsyncpa [#allocation6 + $0x1], 1 }
 0x6f9   :  { %2155 = vsyncpa [#allocation9], 1 }
 0x6fa   :  { %2156 = vsyncpa [#allocation7], 1 }
 0x6fb   :  { %2158 = vsyncpa [#allocation7 + $0x1], 1 }

</bundles_post_ra>
